<compile_context>
chip_gen: v7x
topology: tpu7x:2x2x1
jax: 0.10.0
libtpu: 0.0.40
codegen_flags: <defaults>
</compile_context>

<pallas_src>
import jax
import jax.numpy as jnp
import numpy as np
from jax.experimental import pallas as pl
from jax.experimental.pallas import tpu as pltpu


def _attn_pool_kernel(x_ref, mask_ref, qk_ref, bias_ref, o_ref):
    # x_ref:    (TB, S, Dp) f32   streamed activations (D zero-padded to Dp)
    # mask_ref: (TB, S)     f32   0/1 validity mask
    # qk_ref:   (TB, Dp)    f32   host-folded  scale * q @ Wk
    # bias_ref: (TB, 1)     f32   host-folded  scale * q . bk
    # o_ref:    (TB, Dp)    f32   pooled output
    x = x_ref[...]                                            # (TB, S, Dp)

    # scores[b, s] = qk[b] . x[b, s] + bias[b]   — batched matvec on the MXU
    # (M = 1 per batch); no (TB, S, Dp) broadcast temporary is created.
    qk3 = qk_ref[...][:, None, :]                             # (TB, 1, Dp)
    scores = jnp.einsum("bqd,bkd->bqk", qk3, x,
                        preferred_element_type=jnp.float32)[:, 0, :]   # (TB, S)
    scores = scores + bias_ref[...]                           # broadcast (TB, 1)

    # masked_fill(~mask, -10000.0) — faithful to the reference.
    scores = jnp.where(mask_ref[...] > 0, scores, jnp.float32(-10000.0))

    # Softmax over S (exact normalizer: free in a memory-bound kernel).
    scores = scores - jnp.max(scores, axis=-1, keepdims=True)
    e = jnp.exp(scores)
    attn = e / jnp.sum(e, axis=-1, keepdims=True)             # (TB, S)

    # pooled[b, d] = sum_s attn[b, s] * x[b, s, d]  — second batched matmul.
    pooled = jnp.einsum("bqk,bkd->bqd", attn[:, None, :], x,
                        preferred_element_type=jnp.float32)[:, 0, :]   # (TB, Dp)
    o_ref[...] = pooled.astype(o_ref.dtype)


def _round_up(n, m):
    return -(-n // m) * m


def _vmem_capacity_bytes(default=64 << 20):
    """Physical VMEM of the local chip; conservative default if unknown."""
    try:
        info = pltpu.get_tpu_info()
    except Exception:
        return default
    for name in ("vmem_capacity_bytes", "vmem_size_bytes", "vmem_bytes"):
        v = getattr(info, name, None)
        if v:
            return int(v)
    return default


def attn_pool(x, mask, wq, bq, wk, bk, *, tb=None):
    """x: (B, S, D) f32, mask: (B, S) bool, wq/wk: (D, D) PyTorch (out, in),
    bq/bk: (D,).  Returns (B, D) f32."""
    B, S, D = x.shape
    scale = float(D) ** (-0.5)

    # ---- host-side folds (tiny XLA ops, done once) ----------------------
    x0 = x[:, 0, :]                                   # (B, D)
    q = x0 @ wq.T + bq                                # (B, D)
    qk = (q @ wk) * scale                             # (B, D)
    bias = (q @ bk).reshape(B, 1) * scale             # (B, 1)
    mask_f = mask.astype(jnp.float32)                 # (B, S)

    # ---- pad D to a lane-dense multiple of 128 ---------------------------
    Dp = _round_up(max(D, 128), 128)
    if Dp != D:
        x = jnp.pad(x, ((0, 0), (0, 0), (0, Dp - D)))
        qk = jnp.pad(qk, ((0, 0), (0, Dp - D)))

    # ---- per-generation tile sizing --------------------------------------
    vmem_cap = _vmem_capacity_bytes()
    # ~36 MiB scoped limit on 64 MiB chips (v7x), 64 MiB on 128 MiB chips.
    vmem_limit = (36 << 20) if vmem_cap <= (64 << 20) else (64 << 20)
    row_bytes = S * Dp * 4                            # one batch's x slab
    b_pad8 = _round_up(B, 8)
    if tb is None:
        x_budget = min(16 << 20, vmem_limit // 2)     # double-buffered x budget
        tb = max(8, (x_budget // (2 * row_bytes)) // 8 * 8)
        tb = min(tb, b_pad8)                          # don't pad tiny batches up
        if b_pad8 >= 16:                              # >=2 blocks -> both v7x TCs
            tb = min(tb, max(8, (b_pad8 // 2) // 8 * 8))
    tb = max(8, _round_up(tb, 8))

    n_blocks = -(-B // tb)
    # Rebalance tb so the final padded batch stays close to round8(B).
    tb = min(tb, _round_up(-(-b_pad8 // n_blocks), 8))
    b_pad = n_blocks * tb
    if b_pad != B:
        pad = b_pad - B
        x = jnp.pad(x, ((0, pad), (0, 0), (0, 0)))
        mask_f = jnp.pad(mask_f, ((0, pad), (0, 0)), constant_values=1.0)
        qk = jnp.pad(qk, ((0, pad), (0, 0)))
        bias = jnp.pad(bias, ((0, pad), (0, 0)))

    out = pl.pallas_call(
        _attn_pool_kernel,
        out_shape=jax.ShapeDtypeStruct((b_pad, Dp), jnp.float32),
        grid=(n_blocks,),
        in_specs=[
            pl.BlockSpec((tb, S, Dp), lambda i: (i, 0, 0)),   # x (streamed)
            pl.BlockSpec((tb, S), lambda i: (i, 0)),          # mask
            pl.BlockSpec((tb, Dp), lambda i: (i, 0)),         # folded qk
            pl.BlockSpec((tb, 1), lambda i: (i, 0)),          # folded bias
        ],
        out_specs=pl.BlockSpec((tb, Dp), lambda i: (i, 0)),   # lane-dense
        compiler_params=pltpu.CompilerParams(
            dimension_semantics=("parallel",),
            vmem_limit_bytes=vmem_limit),
    )(x, mask_f, qk, bias)
    return out[:B, :D]


def attn_pool_ref(x, mask, wq, bq, wk, bk):
    """Pure-JAX reference mirroring the PyTorch forward."""
    D = x.shape[-1]
    scale = float(D) ** (-0.5)
    q = x[:, :1] @ wq.T + bq                                        # (B, 1, D)
    k = x @ wk.T + bk                                               # (B, S, D)
    scores = jnp.squeeze(q @ jnp.swapaxes(k, -2, -1), 1) * scale    # (B, S)
    scores = jnp.where(mask, scores, jnp.float32(-10000.0))
    attn = jax.nn.softmax(scores, axis=-1)[..., None]               # (B, S, 1)
    return jnp.sum(attn * x, axis=1)                                # (B, D)


if __name__ == "__main__":
    B, S, D = 2, 8, 32

    key = jax.random.PRNGKey(0)
    k_x, k_wq, k_bq, k_wk, k_bk, k_m = jax.random.split(key, 6)

    x = jax.random.normal(k_x, (B, S, D), dtype=jnp.float32)
    # nn.Linear(d_model, d_model): weight (D, D), bias (D,)
    wq = jax.random.normal(k_wq, (D, D), dtype=jnp.float32) * 0.1
    bq = jax.random.normal(k_bq, (D,), dtype=jnp.float32) * 0.1
    wk = jax.random.normal(k_wk, (D, D), dtype=jnp.float32) * 0.1
    bk = jax.random.normal(k_bk, (D,), dtype=jnp.float32) * 0.1
    mask = jax.random.bernoulli(k_m, 0.7, (B, S))
    mask = mask.at[:, 0].set(True)   # ensure at least one valid position

    out = attn_pool(x, mask, wq, bq, wk, bk)
    out = jax.block_until_ready(out)

    ref = attn_pool_ref(x, mask, wq, bq, wk, bk)
    # Tolerance covers the host-side weight fold's different f32 rounding
    # (the softmax normalizer is now exact).
    np.testing.assert_allclose(np.asarray(out), np.asarray(ref),
                               rtol=1e-3, atol=1e-4)
    print("KERNEL_OK")
</pallas_src>

<mosaic_0001>
module attributes {stable_mosaic.version = 11 : i64} {
  func.func @_attn_pool_kernel(%arg0: i32, %arg1: memref<8x8x128xf32, #tpu.memory_space<vmem>>, %arg2: memref<8x8xf32, #tpu.memory_space<vmem>>, %arg3: memref<8x128xf32, #tpu.memory_space<vmem>>, %arg4: memref<8x1xf32, #tpu.memory_space<vmem>>, %arg5: memref<8x128xf32, #tpu.memory_space<vmem>>) attributes {dimension_semantics = [#tpu.dimension_semantics<parallel>], iteration_bounds = array<i64: 1>, scalar_prefetch = 0 : i64, scratch_operands = 0 : i64, tpu.core_type = #tpu.core_type<tc>, window_params = [{transform_indices = @transform_0, window_bounds = array<i64: 8, 8, 128>}, {transform_indices = @transform_1, window_bounds = array<i64: 8, 8>}, {transform_indices = @transform_2, window_bounds = array<i64: 8, 128>}, {transform_indices = @transform_3, window_bounds = array<i64: 8, 1>}, {transform_indices = @transform_4, window_bounds = array<i64: 8, 128>}]} {
    %c0 = arith.constant 0 : index
    %c0_0 = arith.constant 0 : index
    %c0_1 = arith.constant 0 : index
    %0 = vector.load %arg1[%c0, %c0_0, %c0_1] : memref<8x8x128xf32, #tpu.memory_space<vmem>>, vector<8x8x128xf32>
    %c0_2 = arith.constant 0 : index
    %c0_3 = arith.constant 0 : index
    %1 = vector.load %arg3[%c0_2, %c0_3] : memref<8x128xf32, #tpu.memory_space<vmem>>, vector<8x128xf32>
    %2 = vector.shape_cast %1 : vector<8x128xf32> to vector<8x1x128xf32>
    "tpu.trace_start"() <{level = 10 : i32, message = "bqd,bkd->bqk"}> : () -> ()
    %cst = arith.constant dense<0.000000e+00> : vector<8x1x8xf32>
    %3 = tpu.matmul %2, %0, %cst {dimension_numbers = #tpu.dot_dimension_numbers<[2], [2], [1], [1], [0, 0, 0, 1, 1, 1], [0], [0]>} : vector<8x1x128xf32>, vector<8x8x128xf32>, vector<8x1x8xf32> -> vector<8x1x8xf32>
    "tpu.trace_stop"() : () -> ()
    %4 = vector.shape_cast %3 : vector<8x1x8xf32> to vector<8x8xf32>
    %c0_4 = arith.constant 0 : index
    %c0_5 = arith.constant 0 : index
    %5 = vector.load %arg4[%c0_4, %c0_5] : memref<8x1xf32, #tpu.memory_space<vmem>>, vector<8x1xf32>
    %6 = vector.broadcast %5 : vector<8x1xf32> to vector<8x8xf32>
    %7 = arith.addf %4, %6 : vector<8x8xf32>
    %c0_6 = arith.constant 0 : index
    %c0_7 = arith.constant 0 : index
    %8 = vector.load %arg2[%c0_6, %c0_7] : memref<8x8xf32, #tpu.memory_space<vmem>>, vector<8x8xf32>
    %cst_8 = arith.constant 0.000000e+00 : f32
    %9 = vector.broadcast %cst_8 : f32 to vector<8x8xf32>
    %10 = arith.cmpf ogt, %8, %9 : vector<8x8xf32>
    %cst_9 = arith.constant -1.000000e+04 : f32
    %11 = vector.broadcast %cst_9 : f32 to vector<8x8xf32>
    %12 = arith.select %10, %7, %11 : vector<8x8xi1>, vector<8x8xf32>
    %cst_10 = arith.constant dense<0xFF800000> : vector<8xf32>
    %13 = vector.multi_reduction <maximumf>, %12, %cst_10 [1] : vector<8x8xf32> to vector<8xf32>
    %14 = vector.shape_cast %13 : vector<8xf32> to vector<8x1xf32>
    %15 = vector.broadcast %14 : vector<8x1xf32> to vector<8x8xf32>
    %16 = arith.subf %12, %15 : vector<8x8xf32>
    %17 = math.exp %16 : vector<8x8xf32>
    %cst_11 = arith.constant dense<0.000000e+00> : vector<8xf32>
    %18 = vector.multi_reduction <add>, %17, %cst_11 [1] : vector<8x8xf32> to vector<8xf32>
    %19 = vector.shape_cast %18 : vector<8xf32> to vector<8x1xf32>
    %20 = vector.broadcast %19 : vector<8x1xf32> to vector<8x8xf32>
    %21 = arith.divf %17, %20 : vector<8x8xf32>
    %22 = vector.shape_cast %21 : vector<8x8xf32> to vector<8x1x8xf32>
    "tpu.trace_start"() <{level = 10 : i32, message = "bqk,bkd->bqd"}> : () -> ()
    %cst_12 = arith.constant dense<0.000000e+00> : vector<8x1x128xf32>
    %23 = tpu.matmul %22, %0, %cst_12 {dimension_numbers = #tpu.dot_dimension_numbers<[2], [1], [1], [2], [0, 0, 0, 1, 1, 2], [0], [0]>} : vector<8x1x8xf32>, vector<8x8x128xf32>, vector<8x1x128xf32> -> vector<8x1x128xf32>
    "tpu.trace_stop"() : () -> ()
    %24 = vector.shape_cast %23 : vector<8x1x128xf32> to vector<8x128xf32>
    %c0_13 = arith.constant 0 : index
    %c0_14 = arith.constant 0 : index
    %25 = vector.load %arg5[%c0_13, %c0_14] : memref<8x128xf32, #tpu.memory_space<vmem>>, vector<8x128xf32>
    tpu.vector_store %arg5[%c0_13, %c0_14], %24 {strides = array<i32>} : memref<8x128xf32, #tpu.memory_space<vmem>>, vector<8x128xf32>,
    return
  }
  func.func @transform_0(%arg0: i32) -> (i32, i32, i32) {
    %c0_i32 = arith.constant 0 : i32
    %c0_i32_0 = arith.constant 0 : i32
    %c0_i32_1 = arith.constant 0 : i32
    return %arg0, %c0_i32, %c0_i32_0 : i32, i32, i32
  }
  func.func @transform_1(%arg0: i32) -> (i32, i32) {
    %c0_i32 = arith.constant 0 : i32
    %c0_i32_0 = arith.constant 0 : i32
    return %arg0, %c0_i32 : i32, i32
  }
  func.func @transform_2(%arg0: i32) -> (i32, i32) {
    %c0_i32 = arith.constant 0 : i32
    %c0_i32_0 = arith.constant 0 : i32
    return %arg0, %c0_i32 : i32, i32
  }
  func.func @transform_3(%arg0: i32) -> (i32, i32) {
    %c0_i32 = arith.constant 0 : i32
    %c0_i32_0 = arith.constant 0 : i32
    return %arg0, %c0_i32 : i32, i32
  }
  func.func @transform_4(%arg0: i32) -> (i32, i32) {
    %c0_i32 = arith.constant 0 : i32
    %c0_i32_0 = arith.constant 0 : i32
    return %arg0, %c0_i32 : i32, i32
  }
}

</mosaic_0001>

<bundles_post_ra>
// kernel: tpu_custom_call.1
= control target key start
LH: loop header
LB: loop body
LE: loop exit
PB: predicated region body
PF: predicated region fallthrough
CT: control target
= control target key end

     0   :  { %9 = vsyncpa [#allocation3], 0  ;;  %s1755_s0 = inlined_call_operand.hbm [shape: f32[8,8,128], index: 0, kind: input, shape index: {}]   ;;  %s1756_s1 = inlined_call_operand.vmem [shape: f32[8,8], index: 1, kind: input, shape index: {}]   ;;  %s1757_s2 = inlined_call_operand.vmem [shape: f32[8,128], index: 2, kind: input, shape index: {}]   ;;  %s1758_s3 = inlined_call_operand.vmem [shape: f32[8,1], index: 3, kind: input, shape index: {}]   ;;  %s1759_s4 = inlined_call_operand.hbm [shape: f32[8,128], index: 4, kind: output, shape index: {}]  }
   0x1   :  { %10 = vsyncpa [#allocation4], 0  ;;  %s1579_s15 = smov [#allocation2]   ;;  %s1531_s19 = scalar_lea.hbm %s1755_s0, 1024 }
   0x2   :  { %s16_s16 = sshll.u32 %s1579_s15, 4  ;;  %p1532_p0 = scmp.ne.s32.totalorder %s1755_s0, %s1531_s19  ;;  %s17_s16 = int_to_ptr.vmem [resolvable:$true] %s16_s16 }
   0x3   :  { %p1535_p1 = scmp.lt.u32.totalorder %s1531_s19, %s1755_s0 }
   0x5   :  { %p1537_p2 = pnand %p1535_p1, %p1532_p0 }
   0x7   :  { %1540 = shalt.err (!%p1537_p2)
}
   0x8   :  { %s1541_s24 = scalar_lea.vmem %s17_s16, 1024  ;;  %p1546_p4 = scmp.lt.s32.totalorder %s17_s16, %s17_s16 }
   0x9   :  { %p1542_p3 = scmp.ne.s32.totalorder %s17_s16, %s1541_s24  ;;  %p1547_p5 = scmp.lt.s32.totalorder %s1541_s24, %s1541_s24 }
   0xb   :  { %p1548_p6 = por %p1547_p5, %p1546_p4 }
   0xd   :  { %p1549_p7 = pnand %p1548_p6, %p1542_p3 }
   0xf   :  { %1552 = shalt.err (!%p1549_p7)
}
  0x10   :  { %s1580_s25 = smov 128   ;;  %s1581_s26 = smov 8  }
  0x11   :  { %22 = dma.hbm_to_vmem [thread:$0]  %s1755_s0, 1024, %s17_s16, [#allocation3], %s1580_s25, %s1580_s25, %s1581_s26  }
  0x12   :  { %1575 = dma.done.wait [#allocation3], 1024  }
  0x13   :  { %1576 = vsyncadd [#allocation3], 4294966272  ;;  %v46_v0 = vlaneseq  ;;  %v1582_v1 = vmov 0.0   ;;  %v1583_v2 = vmov 1966171168   ;;  %vm1584_vm0 = vmmov 0  }
  0x14   :  { %1437 = vmatprep.subr.mxu0 %v1582_v1  ;;  %1442 = vmatprep.subr.mxu1 %v1582_v1  ;;  %v44_v3 = vunpack.c.l.s4 %v1583_v2  ;;  %v1585_v6 = vmov 0   ;;  %v32_v8 = vld [vmem:[#allocation2] sm:$0xff]  ;;  %v33_v9 = vld [vmem:[#allocation2 + $0x8] sm:$0xff]  ;;  %v1639_v14 = vld [vmem:[#allocation2 + $0x10] sm:$0xff]  ;;  %vm698_vm1 = vcmask 1041409   ;;  %vm701_vm2 = vcmask 1042434  }
  0x15   :  { %1439 = vmatprep.mubr.msk.f32.mxu0 %vm1584_vm0, %v1582_v1  ;;  %v47_v4 = vshrl.u32 %v46_v0, 7  ;;  %1444 = vmatprep.mubr.msk.f32.mxu1 %vm1584_vm0, %v1582_v1  ;;  %v40_v10 = vld [vmem:[%s1757_s2] sm:$0xff]  ;;  %v1646_v20 = vld [vmem:[#allocation2 + $0x18] sm:$0xff]  ;;  %v1658_v24 = vld [vmem:[#allocation2 + $0x28] sm:$0xff]  ;;  %vm704_vm3 = vcmask 1043459   ;;  %vm707_vm4 = vcmask 1044484  }
  0x16   :  { %v45_v5 = vunpack.c.0.s8 %v44_v3  ;;  %1525 = vset.pattern.permute.xlu0 %v1585_v6  ;;  %1438 = vmatpush3.xpose.msra.mxu0 %v32_v8  ;;  %v42_v11 = vcombine.high %v40_v10, %v40_v10  ;;  %v659_v17 = vld [vmem:[%s1758_s3] sm:$0xff]  ;;  %v1665_v26 = vld [vmem:[#allocation2 + $0x30] sm:$0xff]  ;;  %v1672_v28 = vld [vmem:[#allocation2 + $0x38] sm:$0xff]  ;;  %vm710_vm5 = vcmask 1045509   ;;  %vm713_vm6 = vcmask 1046534  }
  0x17   :  { %1443 = vmatpush3.xpose.msra.mxu1 %v33_v9  ;;  %1447 = vmatprep.subr.mxu0 %v1582_v1  ;;  %v1652_v22 = vld [vmem:[#allocation2 + $0x20] sm:$0xff]  ;;  %vm716_vm7 = vcmask 1047559   ;;  %vm720_vm9 = vcmask 64512  }
  0x18   :  { %v1630_v7 = vsub.s32 %v45_v5, %v47_v4  ;;  %1452 = vmatprep.subr.mxu1 %v1582_v1  ;;  %662 = vperm.xlu0 %1525, %v659_v17  }
  0x1a   :  { %v49_v12 = vrot.slane %v40_v10, %v1630_v7  ;;  %v56_v16 = vrot.slane %v42_v11, %v1630_v7 }
  0x1c   :  { %v65_v13 = vrot.slane %v49_v12, %v1630_v7  ;;  %v57_v15 = vcombine.high %v49_v12, %v49_v12  ;;  %v58_v23 = vcombine.high %v56_v16, %v56_v16  ;;  %v72_v25 = vrot.slane %v56_v16, %v1630_v7 }
  0x1e   :  { %v87_v18 = vcombine.high %v65_v13, %v65_v13  ;;  %1440 = vmatmul.mubr.f32.vlgmr.msra.gmra.mrb[0].mxu0 %v65_v13  ;;  %v79_v19 = vrot.slane %v57_v15, %v1630_v7  ;;  %v86_v27 = vrot.slane %v58_v23, %v1630_v7  ;;  %v88_v29 = vcombine.high %v72_v25, %v72_v25 }
  0x1f   :  { %1448 = vmatpush3.xpose.msra.mxu0 %v1639_v14  ;;  %1449 = vmatprep.mubr.msk.f32.mxu0 %vm1584_vm0, %v1582_v1 }
  0x20   :  { %v89_v21 = vcombine.high %v79_v19, %v79_v19  ;;  %1445 = vmatmul.mubr.f32.vlgmr.msra.gmra.mrb[0].mxu1 %v79_v19  ;;  %1457 = vmatprep.subr.mxu0 %v1582_v1  ;;  %v90_v30 = vcombine.high %v86_v27, %v86_v27 }
  0x21   :  { %1453 = vmatpush3.xpose.msra.mxu1 %v1646_v20  ;;  %1454 = vmatprep.mubr.msk.f32.mxu1 %vm1584_vm0, %v1582_v1 }
  0x22   :  { %1450 = vmatmul.mubr.f32.vlgmr.msra.gmra.mrb[2].mxu0 %v87_v18  ;;  %1462 = vmatprep.subr.mxu1 %v1582_v1 }
  0x23   :  { %1458 = vmatpush3.xpose.msra.mxu0 %v1652_v22  ;;  %1459 = vmatprep.mubr.msk.f32.mxu0 %vm1584_vm0, %v1582_v1 }
  0x24   :  { %1455 = vmatmul.mubr.f32.vlgmr.msra.gmra.mrb[2].mxu1 %v89_v21  ;;  %1467 = vmatprep.subr.mxu0 %v1582_v1 }
  0x25   :  { %1463 = vmatpush3.xpose.msra.mxu1 %v1658_v24  ;;  %1464 = vmatprep.mubr.msk.f32.mxu1 %vm1584_vm0, %v1582_v1 }
  0x26   :  { %1460 = vmatmul.mubr.f32.vlgmr.msra.gmra.mrb[4].mxu0 %v72_v25  ;;  %1472 = vmatprep.subr.mxu1 %v1582_v1 }
  0x27   :  { %1468 = vmatpush3.xpose.msra.mxu0 %v1665_v26  ;;  %1469 = vmatprep.mubr.msk.f32.mxu0 %vm1584_vm0, %v1582_v1 }
  0x28   :  { %1465 = vmatmul.mubr.f32.vlgmr.msra.gmra.mrb[4].mxu1 %v86_v27  ;;  %1477 = vmatprep.subr.mxu0 %v1582_v1 }
  0x29   :  { %1473 = vmatpush3.xpose.msra.mxu1 %v1672_v28  ;;  %1474 = vmatprep.mubr.msk.f32.mxu1 %vm1584_vm0, %v1582_v1 }
  0x2a   :  { %1470 = vmatmul.mubr.f32.vlgmr.msra.gmra.mrb[6].mxu0 %v88_v29  ;;  %1482 = vmatprep.subr.mxu1 %v1582_v1 }
  0x2b   :  { %1478 = vmatpush3.msra.mxu0 %v32_v8  ;;  %1479 = vmatprep.mubr.msk.f32.mxu0 %vm1584_vm0, %v1582_v1  ;;  %v687_v8 = vld [vmem:[%s1756_s1] sm:$0xff]  ;;  %s1586_s1 = smov [#allocation5]  }
  0x2c   :  { %1475 = vmatmul.mubr.f32.vlgmr.msra.gmra.mrb[6].mxu1 %v90_v30  ;;  %1487 = vmatprep.subr.mxu0 %v1582_v1  ;;  %vm688_vm8 = vcmp.gt.f32.partialorder %v687_v8, 0.0  ;;  %s1388_s6 = sshll.u32 %s1586_s1, 4  ;;  %s1389_s6 = int_to_ptr.vmem [resolvable:$true] %s1388_s6 }
  0x2d   :  { %1483 = vmatpush3.msra.mxu1 %v33_v9  ;;  %1484 = vmatprep.mubr.msk.f32.mxu1 %vm1584_vm0, %v1582_v1  ;;  %s1553_s7 = scalar_lea.vmem %s1389_s6, 128  ;;  %p1558_p9 = scmp.lt.s32.totalorder %s1389_s6, %s1389_s6 }
  0x2e   :  { %1492 = vmatprep.subr.mxu1 %v1582_v1  ;;  %p1554_p8 = scmp.ne.s32.totalorder %s1389_s6, %s1553_s7  ;;  %p1559_p10 = scmp.lt.s32.totalorder %s1553_s7, %s1553_s7 }
  0x30   :  { %p1560_p11 = por %p1559_p10, %p1558_p9 }
  0x32   :  { %p1561_p12 = pnand %p1560_p11, %p1554_p8 }
  0x97   :  { %v663_v31 = vpop.permute.xlu0 %662 }
  0x98   :  { %v664_v32 = vrot.slane %v663_v31, 1  ;;  %v665_v35 = vrot.slane %v663_v31, 2  ;;  %v666_v39 = vrot.slane %v663_v31, 3  ;;  %v667_v45 = vrot.slane %v663_v31, 4 }
  0x99   :  { %v668_v56 = vrot.slane %v663_v31, 5  ;;  %v669_v62 = vrot.slane %v663_v31, 6  ;;  %v670_v5 = vrot.slane %v663_v31, 7 }
  0xf1   :  { %v165_v33 = vpop.f32.mrb[0].mxu0 }
  0xf2   :  { %v1441_v34 = vpop.f32.mrb[1].mxu0  ;;  %v679_v41 = vadd.f32 %v663_v31, %v165_v33 }
  0xf3   :  { %v235_v36 = vpop.f32.mrb[0].mxu1 }
  0xf4   :  { %v680_v37 = vadd.f32 %v664_v32, %v235_v36  ;;  %v1446_v38 = vpop.f32.mrb[1].mxu1 }
  0xf5   :  { %v305_v40 = vpop.f32.mrb[2].mxu0 }
  0xf6   :  { %v697_v42 = vrot.slane %v680_v37, 7  ;;  %v681_v43 = vadd.f32 %v665_v35, %v305_v40  ;;  %v1451_v44 = vpop.f32.mrb[3].mxu0 }
  0xf7   :  { %v375_v46 = vpop.f32.mrb[2].mxu1 }
  0xf8   :  { %v699_v47 = vsel %vm698_vm1, %v697_v42, %v679_v41  ;;  %v700_v48 = vrot.slane %v681_v43, 6  ;;  %v682_v49 = vadd.f32 %v666_v39, %v375_v46  ;;  %v1456_v50 = vpop.f32.mrb[3].mxu1 }
  0xf9   :  { %v445_v51 = vpop.f32.mrb[4].mxu0 }
  0xfa   :  { %v702_v52 = vsel %vm701_vm2, %v700_v48, %v699_v47  ;;  %v703_v53 = vrot.slane %v682_v49, 5  ;;  %v683_v54 = vadd.f32 %v667_v45, %v445_v51  ;;  %v1461_v55 = vpop.f32.mrb[5].mxu0 }
  0xfb   :  { %v515_v57 = vpop.f32.mrb[4].mxu1 }
  0xfc   :  { %v705_v58 = vsel %vm704_vm3, %v703_v53, %v702_v52  ;;  %v706_v59 = vrot.slane %v683_v54, 4  ;;  %v684_v60 = vadd.f32 %v668_v56, %v515_v57  ;;  %v1466_v61 = vpop.f32.mrb[5].mxu1 }
  0xfd   :  { %v585_v63 = vpop.f32.mrb[6].mxu0 }
  0xfe   :  { %v708_v0 = vsel %vm707_vm4, %v706_v59, %v705_v58  ;;  %v709_v2 = vrot.slane %v684_v60, 3  ;;  %v685_v3 = vadd.f32 %v669_v62, %v585_v63  ;;  %v1471_v4 = vpop.f32.mrb[7].mxu0 }
  0xff   :  { %v655_v6 = vpop.f32.mrb[6].mxu1 }
 0x100   :  { %v711_v9 = vsel %vm710_vm5, %v709_v2, %v708_v0  ;;  %v712_v10 = vrot.slane %v685_v3, 2  ;;  %v686_v11 = vadd.f32 %v670_v5, %v655_v6  ;;  %v1476_v12 = vpop.f32.mrb[7].mxu1 }
 0x102   :  { %v715_v13 = vrot.slane %v686_v11, 1  ;;  %v714_v15 = vsel %vm713_vm6, %v712_v10, %v711_v9 }
 0x104   :  { %v717_v16 = vsel %vm716_vm7, %v715_v13, %v714_v15 }
 0x105   :  { %v719_v17 = vsel %vm688_vm8, %v717_v16, -10000.0 }
 0x106   :  { %v721_v18 = vsel %vm720_vm9, %v719_v17, -inf }
 0x107   :  { %722 = vmax.xlane.f32.xlu0 %v721_v18 }
 0x194   :  { %v723_v19 = vpop.xlane.xlu0 %722 }
 0x195   :  { %v724_v21 = vsub.f32 %v719_v17, %v723_v19 }
 0x197   :  { %v725_v23 = vmul.f32 1.442695, %v724_v21 }
 0x199   :  { %1527 = vpow2.f32 %v725_v23 }
 0x1a3   :  { %v1528_v25 = vpop.eup %1527 }
 0x1a4   :  { %v727_v27 = vsel %vm720_vm9, %v1528_v25, 0.0 }
 0x1a5   :  { %728 = vadd.xlane.f32.xlu1 %v727_v27 }
 0x232   :  { %v729_v29 = vpop.xlane.xlu1 %728 }
 0x233   :  { %1529 = vrcp.f32 %v729_v29 }
 0x23d   :  { %v1530_v30 = vpop.eup %1529 }
 0x23e   :  { %v731_v31 = vmul.f32 %v1530_v30, %v1528_v25 }
 0x240   :  { %v733_v32 = vcombine.high %v731_v31, %v731_v31  ;;  %v740_v33 = vrot.slane %v731_v31, %v1630_v7 }
 0x242   :  { %v756_v34 = vrot.slane %v740_v33, %v1630_v7  ;;  %v748_v35 = vcombine.high %v740_v33, %v740_v33  ;;  %v747_v37 = vrot.slane %v733_v32, %v1630_v7 }
 0x244   :  { %1480 = vmatmul.mubr.msk.f32.vlgmr.msra.gmra.mrb[8].mxu0 %vm720_vm9, %v756_v34  ;;  %v770_v36 = vrot.slane %v748_v35, %v1630_v7  ;;  %v778_v38 = vcombine.high %v756_v34, %v756_v34  ;;  %v749_v40 = vcombine.high %v747_v37, %v747_v37 }
 0x245   :  { %1488 = vmatpush3.msra.mxu0 %v1639_v14  ;;  %1489 = vmatprep.mubr.msk.f32.mxu0 %vm1584_vm0, %v1582_v1  ;;  %v763_v14 = vrot.slane %v747_v37, %v1630_v7 }
 0x246   :  { %1485 = vmatmul.mubr.msk.f32.vlgmr.msra.gmra.mrb[8].mxu1 %vm720_vm9, %v770_v36  ;;  %1497 = vmatprep.subr.mxu0 %v1582_v1  ;;  %v780_v39 = vcombine.high %v770_v36, %v770_v36 }
 0x247   :  { %1493 = vmatpush3.msra.mxu1 %v1646_v20  ;;  %1494 = vmatprep.mubr.msk.f32.mxu1 %vm1584_vm0, %v1582_v1  ;;  %v777_v20 = vrot.slane %v749_v40, %v1630_v7 }
 0x248   :  { %1490 = vmatmul.mubr.msk.f32.vlgmr.msra.gmra.mrb[10].mxu0 %vm720_vm9, %v778_v38  ;;  %1502 = vmatprep.subr.mxu1 %v1582_v1 }
 0x249   :  { %1498 = vmatpush3.msra.mxu0 %v1652_v22  ;;  %1499 = vmatprep.mubr.msk.f32.mxu0 %vm1584_vm0, %v1582_v1  ;;  %v779_v22 = vcombine.high %v763_v14, %v763_v14 }
 0x24a   :  { %1495 = vmatmul.mubr.msk.f32.vlgmr.msra.gmra.mrb[10].mxu1 %vm720_vm9, %v780_v39  ;;  %1507 = vmatprep.subr.mxu0 %v1582_v1 }
 0x24b   :  { %1503 = vmatpush3.msra.mxu1 %v1658_v24  ;;  %1504 = vmatprep.mubr.msk.f32.mxu1 %vm1584_vm0, %v1582_v1  ;;  %v781_v24 = vcombine.high %v777_v20, %v777_v20 }
 0x24c   :  { %1500 = vmatmul.mubr.msk.f32.vlgmr.msra.gmra.mrb[12].mxu0 %vm720_vm9, %v763_v14  ;;  %1512 = vmatprep.subr.mxu1 %v1582_v1 }
 0x24d   :  { %1508 = vmatpush3.msra.mxu0 %v1665_v26  ;;  %1509 = vmatprep.mubr.msk.f32.mxu0 %vm1584_vm0, %v1582_v1 }
 0x24e   :  { %1505 = vmatmul.mubr.msk.f32.vlgmr.msra.gmra.mrb[12].mxu1 %vm720_vm9, %v777_v20 }
 0x24f   :  { %1513 = vmatpush3.msra.mxu1 %v1672_v28  ;;  %1514 = vmatprep.mubr.msk.f32.mxu1 %vm1584_vm0, %v1582_v1 }
 0x250   :  { %1510 = vmatmul.mubr.msk.f32.vlgmr.msra.gmra.mrb[14].mxu0 %vm720_vm9, %v779_v22 }
 0x252   :  { %1515 = vmatmul.mubr.msk.f32.vlgmr.msra.gmra.mrb[14].mxu1 %vm720_vm9, %v781_v24 }
 0x317   :  { %v850_v41 = vpop.f32.mrb[8].mxu0 }
 0x318   :  { %v1481_v7 = vpop.f32.mrb[9].mxu0 }
 0x319   :  { %v922_v42 = vpop.f32.mrb[8].mxu1 }
 0x31a   :  { %v1366_v26 = vrot.slane %v922_v42, 7  ;;  %v1486_v43 = vpop.f32.mrb[9].mxu1 }
 0x31b   :  { %v994_v44 = vpop.f32.mrb[10].mxu0 }
 0x31c   :  { %v1367_v45 = vsel %vm698_vm1, %v1366_v26, %v850_v41  ;;  %v1368_v46 = vrot.slane %v994_v44, 6  ;;  %v1491_v47 = vpop.f32.mrb[11].mxu0 }
 0x31d   :  { %v1066_v48 = vpop.f32.mrb[10].mxu1 }
 0x31e   :  { %v1369_v28 = vsel %vm701_vm2, %v1368_v46, %v1367_v45  ;;  %v1370_v49 = vrot.slane %v1066_v48, 5  ;;  %v1496_v1 = vpop.f32.mrb[11].mxu1 }
 0x31f   :  { %v1138_v50 = vpop.f32.mrb[12].mxu0 }
 0x320   :  { %v1371_v51 = vsel %vm704_vm3, %v1370_v49, %v1369_v28  ;;  %v1372_v52 = vrot.slane %v1138_v50, 4  ;;  %v1501_v53 = vpop.f32.mrb[13].mxu0 }
 0x321   :  { %v1210_v54 = vpop.f32.mrb[12].mxu1 }
 0x322   :  { %v1373_v55 = vsel %vm707_vm4, %v1372_v52, %v1371_v51  ;;  %v1374_v56 = vrot.slane %v1210_v54, 3  ;;  %v1506_v57 = vpop.f32.mrb[13].mxu1 }
 0x323   :  { %v1282_v58 = vpop.f32.mrb[14].mxu0 }
 0x324   :  { %v1375_v59 = vsel %vm710_vm5, %v1374_v56, %v1373_v55  ;;  %v1376_v60 = vrot.slane %v1282_v58, 2  ;;  %v1511_v61 = vpop.f32.mrb[15].mxu0 }
 0x325   :  { %v1354_v62 = vpop.f32.mrb[14].mxu1 }
 0x326   :  { %v1378_v63 = vrot.slane %v1354_v62, 1  ;;  %v1516_v0 = vpop.f32.mrb[15].mxu1  ;;  %v1377_v2 = vsel %vm713_vm6, %v1376_v60, %v1375_v59 }
 0x328   :  { %v1379_v3 = vsel %vm716_vm7, %v1378_v63, %v1377_v2 }
 0x329   :  { %1381 = vst [vmem:[#allocation5] sm:$0xff] %v1379_v3 }
 0x32a   :  { %1564 = shalt.err (!%p1561_p12)
}
 0x32b   :  { %s1565_s10 = scalar_lea.hbm %s1759_s4, 128 }
 0x32c   :  { %p1566_p13 = scmp.ne.s32.totalorder %s1759_s4, %s1565_s10  ;;  %p1569_p0 = scmp.lt.u32.totalorder %s1565_s10, %s1759_s4 }
 0x32e   :  { %p1571_p1 = pnand %p1569_p0, %p1566_p13 }
 0x330   :  { %1574 = shalt.err (!%p1571_p1)
}
 0x331   :  { %1391 = dma.vmem_to_hbm [thread:$0]  %s1389_s6, 128, %s1759_s4, [#allocation4]  }
 0x332   :  { %1577 = dma.done.wait [#allocation4], 128  }
 0x333   :  { %1578 = vsyncadd [#allocation4], 4294967168 }
 0x334   :  { %1395 = vsyncpa [#allocation3], 1 }
 0x335   :  { %1396 = vsyncpa [#allocation4], 1 }

</bundles_post_ra>
